<compile_context>
chip_gen: v6e
topology: v6e:2x2x1
jax: 0.10.0
libtpu: 0.0.40
codegen_flags: <defaults>
</compile_context>

<pallas_src>
import jax
import jax.numpy as jnp
from jax.experimental import pallas as pl
from jax.experimental.pallas import tpu as pltpu


_LANE = 128
_DEFAULT_BLOCK_BYTES = 4 * 1024 * 1024  # per-block activation budget (~4 MiB)


def _drop_path_kernel(scale_ref, x_ref, o_ref):
    # scale_ref: (block_b, 1) per-sample keep/rescale factors (0 or 1/keep_prob).
    # x_ref / o_ref: (block_b, tile) slab of flattened samples (samples on sublanes).
    o_ref[...] = x_ref[...] * scale_ref[...]


def _sublane_pack(dtype) -> int:
    """Rows per block = native sublane packing of the dtype (8/f32, 16/bf16, 32/int8)."""
    itemsize = jnp.dtype(dtype).itemsize
    return max(8, 32 // max(1, itemsize))


def _choose_tile(M: int, block_b: int, itemsize: int,
                 max_block_bytes: int = _DEFAULT_BLOCK_BYTES) -> int:
    """Largest lane-dense (multiple-of-128) tile within the byte budget.

    The tile does NOT have to divide M; the grid uses cdiv and Pallas masks the ragged
    last block.  Never exceeds the padded row length, never exceeds the budget.
    """
    if M <= _LANE:
        return M  # full row: block dim == full array dim satisfies the tiling rule
    budget_elems = max(_LANE, max_block_bytes // (block_b * itemsize))
    tile = (budget_elems // _LANE) * _LANE
    padded_m = pl.cdiv(M, _LANE) * _LANE
    return max(_LANE, min(tile, padded_m))


def drop_path_pallas(x, seed: int, drop_prob: float = 0.0, training: bool = False):
    """Pallas equivalent of drop_path(x, drop_prob, training)."""
    if drop_prob == 0.0 or not training:
        return x  # identity path, matches the PyTorch early-return

    keep_prob = 1.0 - drop_prob
    B = x.shape[0]

    # Per-sample Bernoulli(keep_prob) mask + rescale, computed once in plain JAX:
    #   torch: random_tensor = floor(keep_prob + U[0,1)); out = x / keep_prob * mask
    u = jax.random.uniform(jax.random.PRNGKey(seed), (B,), dtype=jnp.float32)
    mask = jnp.floor(jnp.float32(keep_prob) + u)
    scale = (mask * jnp.float32(1.0 / keep_prob)).astype(x.dtype).reshape(B, 1)

    # Flatten all non-batch dims -> lane-dense (B, M) layout.
    x_flat = x.reshape(B, -1)
    M = x_flat.shape[1]
    itemsize = jnp.dtype(x.dtype).itemsize

    block_b = _sublane_pack(x.dtype)
    tile = _choose_tile(M, block_b, itemsize)

    nb = pl.cdiv(B, block_b)
    nm = pl.cdiv(M, tile)

    # v7x has 2 TensorCores: make sure a "parallel" axis has >= 2 grid steps when the
    # problem is big enough to split (each block stays >= 128 lanes wide).
    if nb * nm == 1 and M > 2 * _LANE:
        tile = max(_LANE, pl.cdiv(pl.cdiv(M, 2), _LANE) * _LANE)
        nm = pl.cdiv(M, tile)

    # Scoped VMEM: double-buffered in + out (~4 blocks) plus headroom.  Set explicitly
    # so the v5e 16 MiB default never trips; stays well under v7x's 64 MiB physical.
    block_bytes = block_b * tile * itemsize
    vmem_limit = int(min(128 * 1024 * 1024, max(32 * 1024 * 1024, 6 * block_bytes)))

    out_flat = pl.pallas_call(
        _drop_path_kernel,
        out_shape=jax.ShapeDtypeStruct((B, M), x.dtype),
        grid=(nb, nm),
        in_specs=[
            pl.BlockSpec((block_b, 1), lambda i, j: (i, 0)),     # per-sample scales
            pl.BlockSpec((block_b, tile), lambda i, j: (i, j)),  # activations
        ],
        out_specs=pl.BlockSpec((block_b, tile), lambda i, j: (i, j)),
        compiler_params=pltpu.CompilerParams(
            dimension_semantics=("parallel", "parallel"),
            vmem_limit_bytes=vmem_limit,
        ),
    )(scale, x_flat)

    return out_flat.reshape(x.shape)


def drop_path_reference(x, seed: int, drop_prob: float, training: bool):
    """Pure-JAX reference mirroring drop_path_pallas' RNG / scale semantics."""
    if drop_prob == 0.0 or not training:
        return x
    keep_prob = 1.0 - drop_prob
    B = x.shape[0]
    u = jax.random.uniform(jax.random.PRNGKey(seed), (B,), dtype=jnp.float32)
    mask = jnp.floor(jnp.float32(keep_prob) + u)
    scale = (mask * jnp.float32(1.0 / keep_prob)).astype(x.dtype)
    scale = scale.reshape((B,) + (1,) * (x.ndim - 1))
    return x * scale


class DropPath:
    """Mirror of the PyTorch DropPath module."""

    def __init__(self, drop_prob=None):
        self.drop_prob = drop_prob if drop_prob is not None else 0.0
        self.training = True

    def __call__(self, x, seed: int = 0):
        return drop_path_pallas(x, seed, self.drop_prob, self.training)


if __name__ == "__main__":
    import numpy as np

    key = jax.random.PRNGKey(0)

    # ---- main case: B=2, seq=8, hidden=32, f32 -----------------------------------
    B, N, C = 2, 8, 32
    x = jax.random.normal(key, (B, N, C), dtype=jnp.float32)

    drop_prob = 0.25
    keep_prob = 1.0 - drop_prob
    module = DropPath(drop_prob)

    out = jax.block_until_ready(module(x, seed=123))
    ref = jax.block_until_ready(drop_path_reference(x, 123, drop_prob, True))
    np.testing.assert_allclose(np.asarray(out), np.asarray(ref), rtol=1e-6, atol=1e-6)

    # sanity check: each sample is either all-zero or x / keep_prob
    out_np = np.asarray(out)
    x_np = np.asarray(x)
    for b in range(B):
        is_dropped = np.allclose(out_np[b], 0.0, atol=1e-6)
        is_kept = np.allclose(out_np[b], x_np[b] / keep_prob, rtol=1e-5, atol=1e-5)
        assert is_dropped or is_kept, f"sample {b}: neither dropped nor kept/rescaled"

    # ---- ragged case: B not a multiple of 8, M not a multiple of 128, bf16 --------
    key2 = jax.random.PRNGKey(1)
    xb = jax.random.normal(key2, (3, 7, 48), dtype=jnp.bfloat16)
    out_b = jax.block_until_ready(drop_path_pallas(xb, 7, 0.5, True))
    ref_b = jax.block_until_ready(drop_path_reference(xb, 7, 0.5, True))
    np.testing.assert_allclose(
        np.asarray(out_b, dtype=np.float32),
        np.asarray(ref_b, dtype=np.float32),
        rtol=1e-2, atol=1e-2,
    )

    # ---- eval path (identity) ------------------------------------------------------
    module.training = False
    out_eval = jax.block_until_ready(module(x))
    assert np.allclose(np.asarray(out_eval), x_np)

    print("KERNEL_OK")
</pallas_src>

<mosaic_0001>
module attributes {stable_mosaic.version = 11 : i64} {
  func.func @_drop_path_kernel(%arg0: i32, %arg1: i32, %arg2: memref<8x1xf32, #tpu.memory_space<vmem>>, %arg3: memref<8x256xf32, #tpu.memory_space<vmem>>, %arg4: memref<8x256xf32, #tpu.memory_space<vmem>>) attributes {dimension_semantics = [#tpu.dimension_semantics<parallel>, #tpu.dimension_semantics<parallel>], iteration_bounds = array<i64: 1, 1>, scalar_prefetch = 0 : i64, scratch_operands = 0 : i64, tpu.core_type = #tpu.core_type<tc>, window_params = [{transform_indices = @transform_0, window_bounds = array<i64: 8, 1>}, {transform_indices = @transform_1, window_bounds = array<i64: 8, 256>}, {transform_indices = @transform_2, window_bounds = array<i64: 8, 256>}]} {
    %c0 = arith.constant 0 : index
    %c0_0 = arith.constant 0 : index
    %0 = vector.load %arg3[%c0, %c0_0] : memref<8x256xf32, #tpu.memory_space<vmem>>, vector<8x256xf32>
    %c0_1 = arith.constant 0 : index
    %c0_2 = arith.constant 0 : index
    %1 = vector.load %arg2[%c0_1, %c0_2] : memref<8x1xf32, #tpu.memory_space<vmem>>, vector<8x1xf32>
    %2 = vector.broadcast %1 : vector<8x1xf32> to vector<8x256xf32>
    %3 = arith.mulf %0, %2 : vector<8x256xf32>
    %c0_3 = arith.constant 0 : index
    %c0_4 = arith.constant 0 : index
    %4 = vector.load %arg4[%c0_3, %c0_4] : memref<8x256xf32, #tpu.memory_space<vmem>>, vector<8x256xf32>
    tpu.vector_store %arg4[%c0_3, %c0_4], %3 {strides = array<i32>} : memref<8x256xf32, #tpu.memory_space<vmem>>, vector<8x256xf32>,
    return
  }
  func.func @transform_0(%arg0: i32, %arg1: i32) -> (i32, i32) {
    %c0_i32 = arith.constant 0 : i32
    %c0_i32_0 = arith.constant 0 : i32
    return %arg0, %c0_i32 : i32, i32
  }
  func.func @transform_1(%arg0: i32, %arg1: i32) -> (i32, i32) {
    %c0_i32 = arith.constant 0 : i32
    return %arg0, %arg1 : i32, i32
  }
  func.func @transform_2(%arg0: i32, %arg1: i32) -> (i32, i32) {
    %c0_i32 = arith.constant 0 : i32
    return %arg0, %arg1 : i32, i32
  }
}

</mosaic_0001>

<bundles_post_ra>
// kernel: tpu_custom_call.1
= control target key start
LH: loop header
LB: loop body
LE: loop exit
PB: predicated region body
PF: predicated region fallthrough
CT: control target
= control target key end

     0   :  { %v108_v1 = vmov 0   ;;  %s149_s0 = inlined_call_operand.vmem [shape: f32[2,1], index: 0, kind: input, shape index: {}]   ;;  %s150_s1 = inlined_call_operand.vmem [shape: f32[2,256], index: 1, kind: input, shape index: {}]   ;;  %s151_s2 = inlined_call_operand.hbm [shape: f32[2,256], index: 2, kind: output, shape index: {}]  }
   0x1   :  { %v16_v0 = vld [vmem:[%s149_s0] sm:$0xff]  ;;  %85 = vset.pattern.permute.xlu0 %v108_v1 }
   0x2   :  { %19 = vperm.xlu0 %85, %v16_v0  }
   0x3   :  { %7 = vsyncpa [#allocation3], 0  ;;  %v24_v2 = vlaneseq  ;;  %v109_v3 = vmov 269488144   ;;  %v110_v5 = vmov 842150450  }
   0x4   :  { %v22_v4 = vunpack.c.l.s4 %v109_v3  ;;  %v29_v6 = vunpack.c.l.s4 %v110_v5  ;;  %v111_v7 = vmov 1414812756   ;;  %v112_v9 = vmov 1987475062   ;;  %v12_v20 = vld [vmem:[%s150_s1] sm:$0xf] }
   0x5   :  { %v36_v8 = vunpack.c.l.s4 %v111_v7  ;;  %v43_v10 = vunpack.c.l.s4 %v112_v9  ;;  %v25_v11 = vshrl.u32 %v24_v2, 7  ;;  %v13_v22 = vld [vmem:[%s150_s1 + $0x4] sm:$0xf]  ;;  %v14_v23 = vld [vmem:[%s150_s1 + $0x8] sm:$0xf] }
   0x6   :  { %v23_v12 = vunpack.c.0.s8 %v22_v4  ;;  %v30_v13 = vunpack.c.0.s8 %v29_v6  ;;  %v15_v24 = vld [vmem:[%s150_s1 + $0xc] sm:$0xf] }
   0x7   :  { %v37_v14 = vunpack.c.0.s8 %v36_v8  ;;  %v44_v15 = vunpack.c.0.s8 %v43_v10 }
   0x8   :  { %v26_v16 = vsub.s32 %v23_v12, %v25_v11  ;;  %v33_v17 = vsub.s32 %v30_v13, %v25_v11 }
   0x9   :  { %v40_v18 = vsub.s32 %v37_v14, %v25_v11  ;;  %v47_v19 = vsub.s32 %v44_v15, %v25_v11 }
  0x7d   :  { %v20_v21 = vpop.permute.xlu0 %19 }
  0x7e   :  { %v27_v25 = vrot.slane %v20_v21, %v26_v16  ;;  %v34_v26 = vrot.slane %v20_v21, %v33_v17  ;;  %v41_v27 = vrot.slane %v20_v21, %v40_v18  ;;  %v48_v28 = vrot.slane %v20_v21, %v47_v19 }
  0x80   :  { %v53_v29 = vmul.f32 %v27_v25, %v12_v20  ;;  %v54_v30 = vmul.f32 %v34_v26, %v13_v22  ;;  %v55_v31 = vmul.f32 %v41_v27, %v14_v23  ;;  %v56_v32 = vmul.f32 %v48_v28, %v15_v24 }
  0x82   :  { %57 = vst [vmem:[#allocation2] sm:$0xf] %v53_v29  ;;  %58 = vst [vmem:[#allocation2 + $0x4] sm:$0xf] %v54_v30 }
  0x83   :  { %59 = vst [vmem:[#allocation2 + $0x8] sm:$0xf] %v55_v31  ;;  %60 = vst [vmem:[#allocation2 + $0xc] sm:$0xf] %v56_v32 }
  0x84   :  { %65 = vsyncadd [#allocation3], 192  ;;  %s113_s18 = smov [#allocation2]  }
  0x85   :  { %s66_s19 = sshll.u32 %s113_s18, 4  ;;  %s67_s19 = int_to_ptr.vmem [resolvable:$true] %s66_s19 }
  0x86   :  { %s86_s20 = scalar_lea.vmem %s67_s19, 64  ;;  %s90_s21 = scalar_lea.vmem %s67_s19, 256 }
  0x87   :  { %p87_p0 = scmp.ne.s32.totalorder %s67_s19, %s86_s20  ;;  %p91_p1 = scmp.lt.s32.totalorder %s67_s19, %s67_s19 }
  0x88   :  { %p92_p2 = scmp.lt.s32.totalorder %s90_s21, %s86_s20 }
  0x8a   :  { %p93_p3 = por %p92_p2, %p91_p1 }
  0x8c   :  { %p94_p4 = pnand %p93_p3, %p87_p0 }
  0x8e   :  { %97 = shalt.err (!%p94_p4)
}
  0x8f   :  { %s114_s1 = smov 64   ;;  %s115_s22 = smov 4  }
  0x90   :  { %72 = dma.vmem_to_hbm [thread:$0]  %s67_s19, 64, %s151_s2, [#allocation3], %s114_s1, %s114_s1, %s115_s22  }
  0x91   :  { %106 = dma.done.wait [#allocation3], 256  }
  0x92   :  { %107 = vsyncadd [#allocation3], 4294967040 }
  0x93   :  { %76 = vsyncpa [#allocation3], 1 }

</bundles_post_ra>
